<compile_context>
chip_gen: v6e
topology: v6e:2x2x1
jax: 0.10.0
libtpu: 0.0.40
codegen_flags: <defaults>
</compile_context>

<pallas_src>
import functools

import numpy as np
import jax
import jax.numpy as jnp
from jax.experimental import pallas as pl
from jax.experimental.pallas import tpu as pltpu


# ----------------------------------------------------------------------------
# Tiling / VMEM helpers
# ----------------------------------------------------------------------------
def _detect_vmem_limit():
    """Per-generation VMEM budget: ~80% of physical, capped at 112 MiB."""
    try:
        cap = int(pltpu.get_tpu_info().vmem_capacity_bytes)
    except Exception:
        cap = 64 * 1024 * 1024          # conservative fallback (v7x-sized)
    return min((cap * 4) // 5, 112 * 1024 * 1024)


_VMEM_LIMIT = _detect_vmem_limit()
_TM_MATMUL = 512                 # M-row tile for projections / attn-out proj
_TM_FFN = 256                    # M-row tile for the fused FFN (VMEM friendly)
_TM_LN = 512                     # M-row tile for the standalone embedding LN


def _round_up(x, m):
    return (x + m - 1) // m * m


def _choose_row_tile(m, target):
    """Row tile (multiple of 16 for bf16 packing) and padded row count."""
    tm = min(target, _round_up(m, 16))
    return tm, _round_up(m, tm)


def _choose_col_tile(n):
    """Split wide N into two 128-aligned halves (2 parallel blocks, smaller
    weight blocks); otherwise use the full dimension."""
    if n >= 512 and n % 256 == 0:
        return n // 2
    return n


def _pad_rows(x, m_padded):
    m = x.shape[0]
    if m_padded == m:
        return x
    return jnp.pad(x, ((0, m_padded - m), (0, 0)))


def _row(v):
    return v.reshape(1, -1).astype(jnp.float32)


# ----------------------------------------------------------------------------
# Pallas kernels
# ----------------------------------------------------------------------------
def _linear_kernel(x_ref, w_ref, b_ref, o_ref, *, activation):
    """One-shot (full-K) matmul block with bias (+ optional exact-erf GELU)."""
    y = jnp.dot(x_ref[...], w_ref[...], preferred_element_type=jnp.float32)
    y = y + b_ref[...]
    if activation == "gelu":
        y = 0.5 * y * (1.0 + jax.lax.erf(y * 0.7071067811865475))
    o_ref[...] = y.astype(o_ref.dtype)


def linear(x, w, b, activation="none", out_dtype=jnp.bfloat16):
    """act(x @ w + b); x:[M,K] bf16, w:[K,N] bf16, b:[N] -> [M,N] out_dtype."""
    m0, K = x.shape
    N = w.shape[1]
    tm, mp = _choose_row_tile(m0, _TM_MATMUL)
    tn = _choose_col_tile(N)
    xp = _pad_rows(x, mp)
    out = pl.pallas_call(
        functools.partial(_linear_kernel, activation=activation),
        out_shape=jax.ShapeDtypeStruct((mp, N), out_dtype),
        grid=(mp // tm, N // tn),
        in_specs=[
            pl.BlockSpec((tm, K), lambda i, j: (i, 0)),
            pl.BlockSpec((K, tn), lambda i, j: (0, j)),
            pl.BlockSpec((1, tn), lambda i, j: (0, j)),
        ],
        out_specs=pl.BlockSpec((tm, tn), lambda i, j: (i, j)),
        compiler_params=pltpu.CompilerParams(
            dimension_semantics=("parallel", "parallel"),
            vmem_limit_bytes=_VMEM_LIMIT),
    )(xp, w, _row(b))
    return out[:m0] if mp != m0 else out


def _linear_ln_kernel(x_ref, w_ref, b_ref, r_ref, g_ref, be_ref, o_ref, *, eps):
    """LayerNorm((x @ w + b) + residual) * gamma + beta (full-K, no K axis)."""
    y = jnp.dot(x_ref[...], w_ref[...], preferred_element_type=jnp.float32)
    y = y + b_ref[...] + r_ref[...].astype(jnp.float32)
    mu = jnp.mean(y, axis=-1, keepdims=True)
    var = jnp.mean((y - mu) * (y - mu), axis=-1, keepdims=True)
    yn = (y - mu) * jax.lax.rsqrt(var + eps)
    o_ref[...] = (yn * g_ref[...] + be_ref[...]).astype(o_ref.dtype)


def linear_ln(x, w, b, residual, gamma, beta, eps=1e-12, out_dtype=jnp.bfloat16):
    """Attention output projection + add & norm (N = hidden, kept un-tiled)."""
    m0, K = x.shape
    H = w.shape[1]
    tm, mp = _choose_row_tile(m0, _TM_MATMUL)
    xp = _pad_rows(x, mp)
    rp = _pad_rows(residual, mp)
    out = pl.pallas_call(
        functools.partial(_linear_ln_kernel, eps=eps),
        out_shape=jax.ShapeDtypeStruct((mp, H), out_dtype),
        grid=(mp // tm,),
        in_specs=[
            pl.BlockSpec((tm, K), lambda i: (i, 0)),
            pl.BlockSpec((K, H), lambda i: (0, 0)),
            pl.BlockSpec((1, H), lambda i: (0, 0)),
            pl.BlockSpec((tm, H), lambda i: (i, 0)),
            pl.BlockSpec((1, H), lambda i: (0, 0)),
            pl.BlockSpec((1, H), lambda i: (0, 0)),
        ],
        out_specs=pl.BlockSpec((tm, H), lambda i: (i, 0)),
        compiler_params=pltpu.CompilerParams(
            dimension_semantics=("parallel",),
            vmem_limit_bytes=_VMEM_LIMIT),
    )(xp, w, _row(b), rp, _row(gamma), _row(beta))
    return out[:m0] if mp != m0 else out


def _ffn_kernel(x_ref, w1_ref, b1_ref, w2_ref, b2_ref, g_ref, be_ref, o_ref,
                *, eps):
    """Fused FFN: GELU(x@w1+b1) @ w2 + b2 + x, then LayerNorm.

    The [tm, intermediate] activation lives only in VMEM — never written to
    HBM.  Both matmuls take bf16 operands with f32 accumulation.
    """
    x = x_ref[...]
    h = jnp.dot(x, w1_ref[...], preferred_element_type=jnp.float32)
    h = h + b1_ref[...]
    h = 0.5 * h * (1.0 + jax.lax.erf(h * 0.7071067811865475))
    y = jnp.dot(h.astype(w2_ref.dtype), w2_ref[...],
                preferred_element_type=jnp.float32)
    y = y + b2_ref[...] + x.astype(jnp.float32)       # residual = FFN input
    mu = jnp.mean(y, axis=-1, keepdims=True)
    var = jnp.mean((y - mu) * (y - mu), axis=-1, keepdims=True)
    yn = (y - mu) * jax.lax.rsqrt(var + eps)
    o_ref[...] = (yn * g_ref[...] + be_ref[...]).astype(o_ref.dtype)


def ffn(x, w1, b1, w2, b2, gamma, beta, eps=1e-12, out_dtype=jnp.bfloat16):
    """LayerNorm(GELU(x@w1+b1)@w2 + b2 + x); w1/w2 stay VMEM-resident."""
    m0, H = x.shape
    I = w1.shape[1]
    tm, mp = _choose_row_tile(m0, _TM_FFN)
    xp = _pad_rows(x, mp)
    out = pl.pallas_call(
        functools.partial(_ffn_kernel, eps=eps),
        out_shape=jax.ShapeDtypeStruct((mp, H), out_dtype),
        grid=(mp // tm,),
        in_specs=[
            pl.BlockSpec((tm, H), lambda i: (i, 0)),
            pl.BlockSpec((H, I), lambda i: (0, 0)),
            pl.BlockSpec((1, I), lambda i: (0, 0)),
            pl.BlockSpec((I, H), lambda i: (0, 0)),
            pl.BlockSpec((1, H), lambda i: (0, 0)),
            pl.BlockSpec((1, H), lambda i: (0, 0)),
            pl.BlockSpec((1, H), lambda i: (0, 0)),
        ],
        out_specs=pl.BlockSpec((tm, H), lambda i: (i, 0)),
        compiler_params=pltpu.CompilerParams(
            dimension_semantics=("parallel",),
            vmem_limit_bytes=_VMEM_LIMIT),
    )(xp, w1, _row(b1), w2, _row(b2), _row(gamma), _row(beta))
    return out[:m0] if mp != m0 else out


def _layernorm_kernel(x_ref, g_ref, b_ref, o_ref, *, eps):
    x = x_ref[...].astype(jnp.float32)
    mu = jnp.mean(x, axis=-1, keepdims=True)
    var = jnp.mean((x - mu) * (x - mu), axis=-1, keepdims=True)
    xn = (x - mu) * jax.lax.rsqrt(var + eps)
    o_ref[...] = (xn * g_ref[...] + b_ref[...]).astype(o_ref.dtype)


def layernorm(x, gamma, beta, eps=1e-12, out_dtype=jnp.bfloat16):
    """Standalone LayerNorm over the last axis (embedding LN)."""
    m0, H = x.shape
    tm, mp = _choose_row_tile(m0, _TM_LN)
    xp = _pad_rows(x, mp)
    out = pl.pallas_call(
        functools.partial(_layernorm_kernel, eps=eps),
        out_shape=jax.ShapeDtypeStruct((mp, H), out_dtype),
        grid=(mp // tm,),
        in_specs=[
            pl.BlockSpec((tm, H), lambda i: (i, 0)),
            pl.BlockSpec((1, H), lambda i: (0, 0)),
            pl.BlockSpec((1, H), lambda i: (0, 0)),
        ],
        out_specs=pl.BlockSpec((tm, H), lambda i: (i, 0)),
        compiler_params=pltpu.CompilerParams(
            dimension_semantics=("parallel",),
            vmem_limit_bytes=_VMEM_LIMIT),
    )(xp, _row(gamma), _row(beta))
    return out[:m0] if mp != m0 else out


def _attention_kernel(qkv_ref, m_ref, o_ref, *, num_heads, hidden, scale):
    """Per-batch multi-head attention over the packed [S, 3H] QKV slab.

    q/k/v stay bf16 into the MXU (f32 accumulation only); the softmax is f32
    with an exact normalization; probs are cast back to bf16 for the PV
    matmul.  The context is written two heads (=128 lanes) at a time.
    """
    bias = (m_ref[0].astype(jnp.float32) - 1.0) * 10000.0     # (1, S) HF mask
    Dh = hidden // num_heads
    group = 2 if num_heads % 2 == 0 else 1                    # 2*Dh = 128 lanes
    for h0 in range(0, num_heads, group):
        parts = []
        for h in range(h0, h0 + group):
            q = qkv_ref[0, :, h * Dh:(h + 1) * Dh]
            k = qkv_ref[0, :, hidden + h * Dh: hidden + (h + 1) * Dh]
            v = qkv_ref[0, :, 2 * hidden + h * Dh: 2 * hidden + (h + 1) * Dh]
            s = jax.lax.dot_general(q, k, (((1,), (1,)), ((), ())),
                                    preferred_element_type=jnp.float32) * scale
            s = s + bias
            s = s - jnp.max(s, axis=-1, keepdims=True)
            p = jnp.exp(s)
            p = p / jnp.sum(p, axis=-1, keepdims=True)
            parts.append(jnp.dot(p.astype(v.dtype), v,
                                 preferred_element_type=jnp.float32))
        pair = jnp.concatenate(parts, axis=-1) if group > 1 else parts[0]
        o_ref[0, :, h0 * Dh:(h0 + group) * Dh] = pair.astype(o_ref.dtype)


def attention(qkv, mask_f, num_heads, hidden, out_dtype=jnp.bfloat16):
    """qkv:[B,S,3H] bf16, mask_f:[B,1,S] f32 -> context [B,S,H]."""
    B, S, H3 = qkv.shape
    Dh = hidden // num_heads
    scale = 1.0 / float(np.sqrt(Dh))
    return pl.pallas_call(
        functools.partial(_attention_kernel, num_heads=num_heads,
                          hidden=hidden, scale=scale),
        out_shape=jax.ShapeDtypeStruct((B, S, hidden), out_dtype),
        grid=(B,),
        in_specs=[
            pl.BlockSpec((1, S, H3), lambda b: (b, 0, 0)),
            pl.BlockSpec((1, 1, S), lambda b: (b, 0, 0)),
        ],
        out_specs=pl.BlockSpec((1, S, hidden), lambda b: (b, 0, 0)),
        compiler_params=pltpu.CompilerParams(
            dimension_semantics=("parallel",),
            vmem_limit_bytes=_VMEM_LIMIT),
    )(qkv, mask_f)


# ----------------------------------------------------------------------------
# BERT encoder (glue; all hot-path compute routed through Pallas kernels)
# ----------------------------------------------------------------------------
def bert_layer(x, mask_f, p, B, S, nH):
    M, H = x.shape
    qkv = linear(x, p["wqkv"], p["bqkv"])                       # fused Q/K/V: [M, 3H]
    ctx = attention(qkv.reshape(B, S, 3 * H), mask_f, nH, H)    # [B, S, H]
    x1 = linear_ln(ctx.reshape(M, H), p["wo"], p["bo"],
                   x, p["ln1_g"], p["ln1_b"])                   # attn proj + add&norm
    x2 = ffn(x1, p["w1"], p["b1"], p["w2"], p["b2"],
             p["ln2_g"], p["ln2_b"])                            # fused FFN + add&norm
    return x2


def bert_encoder(params, input_ids):
    """Returns the last hidden state (== hidden_states[num_layers])."""
    B, S = input_ids.shape
    H = params["hidden"]
    nH = params["num_heads"]

    mask_f = (input_ids != 0).astype(jnp.float32).reshape(B, 1, S)   # inputs != 0

    # Embeddings (table gather stays in plain JAX glue).
    tok = jnp.take(params["tok_emb"], input_ids, axis=0)             # (B, S, H)
    pos = params["pos_emb"][:S][None, :, :]                          # (1, S, H)
    typ = params["type_emb"][0][None, None, :]                       # token_type_ids = 0
    emb = (tok + pos + typ).reshape(B * S, H)
    x = layernorm(emb, params["emb_ln_g"], params["emb_ln_b"])       # bf16 [M, H]

    for layer_p in params["layers"]:
        x = bert_layer(x, mask_f, layer_p, B, S, nH)
    return x.astype(jnp.float32).reshape(B, S, H)


def hidden_bert_forward(params, inputs, choice, rng_seed=0):
    """Reproduces HiddenBert.forward."""
    B, S = inputs.shape
    if S > 500:
        H = params["hidden"]
        outputs = jnp.zeros((B, 500, H), jnp.float32)
        begpos = list(range(0, S, 250))
        k = min(len(begpos), choice)
        # original uses unseeded np.random.choice; seeded here for determinism
        p = np.random.RandomState(rng_seed).choice(begpos, size=k, replace=False)
        for i in p:
            i = int(i)
            chunk = inputs[:, i:i + 500]
            clen = chunk.shape[1]
            if clen < 500:
                # pad to a fixed 500-token shape (pad id 0 -> masked out) so the
                # compiled program is reused; padded rows are discarded below.
                chunk = jnp.pad(chunk, ((0, 0), (0, 500 - clen)))
            temporal = bert_encoder(params, chunk)
            outputs = outputs.at[:, :clen, :].add(temporal[:, :clen, :])
        return outputs
    return bert_encoder(params, inputs)


# ----------------------------------------------------------------------------
# Deterministic parameter init (synthetic; no checkpoint load)
# ----------------------------------------------------------------------------
def init_params(key, vocab=100, hidden=32, heads=2, layers=2,
                intermediate=128, max_pos=64):
    def nrm(k, shape):
        return 0.02 * jax.random.normal(k, shape, jnp.float32)

    keys = jax.random.split(key, 3 + layers)
    params = {
        "hidden": hidden,
        "num_heads": heads,
        "tok_emb": nrm(keys[0], (vocab, hidden)),
        "pos_emb": nrm(keys[1], (max_pos, hidden)),
        "type_emb": nrm(keys[2], (2, hidden)),
        "emb_ln_g": jnp.ones((hidden,), jnp.float32),
        "emb_ln_b": jnp.zeros((hidden,), jnp.float32),
        "layers": [],
    }
    for l in range(layers):
        lk = jax.random.split(keys[3 + l], 6)
        wq = nrm(lk[0], (hidden, hidden))
        wk = nrm(lk[1], (hidden, hidden))
        wv = nrm(lk[2], (hidden, hidden))
        params["layers"].append({
            # fused Q/K/V weight (bf16 storage, f32 accumulate on the MXU)
            "wqkv": jnp.concatenate([wq, wk, wv], axis=1).astype(jnp.bfloat16),
            "bqkv": jnp.zeros((3 * hidden,), jnp.float32),
            "wo": nrm(lk[3], (hidden, hidden)).astype(jnp.bfloat16),
            "bo": jnp.zeros((hidden,), jnp.float32),
            "ln1_g": jnp.ones((hidden,), jnp.float32),
            "ln1_b": jnp.zeros((hidden,), jnp.float32),
            "w1": nrm(lk[4], (hidden, intermediate)).astype(jnp.bfloat16),
            "b1": jnp.zeros((intermediate,), jnp.float32),
            "w2": nrm(lk[5], (intermediate, hidden)).astype(jnp.bfloat16),
            "b2": jnp.zeros((hidden,), jnp.float32),
            "ln2_g": jnp.ones((hidden,), jnp.float32),
            "ln2_b": jnp.zeros((hidden,), jnp.float32),
        })
    return params


if __name__ == "__main__":
    key = jax.random.PRNGKey(0)
    pkey, dkey = jax.random.split(key)

    params = init_params(pkey, vocab=100, hidden=32, heads=2, layers=2)

    B, S = 2, 8
    inputs = jax.random.randint(dkey, (B, S), 1, 100, dtype=jnp.int32)
    inputs = inputs.at[:, -2:].set(0)   # trailing padding -> exercises the mask

    out = hidden_bert_forward(params, inputs, choice=2)
    out = jax.block_until_ready(out)
    assert out.shape == (B, S, 32) and out.dtype == jnp.float32
    assert bool(jnp.all(jnp.isfinite(out)))
    print("KERNEL_OK")
</pallas_src>

<mosaic_0001>
module attributes {stable_mosaic.version = 11 : i64} {
  func.func @_layernorm_kernel(%arg0: i32, %arg1: memref<16x32xf32, #tpu.memory_space<vmem>>, %arg2: memref<1x32xf32, #tpu.memory_space<vmem>>, %arg3: memref<1x32xf32, #tpu.memory_space<vmem>>, %arg4: memref<16x32xbf16, #tpu.memory_space<vmem>>) attributes {dimension_semantics = [#tpu.dimension_semantics<parallel>], iteration_bounds = array<i64: 1>, scalar_prefetch = 0 : i64, scratch_operands = 0 : i64, tpu.core_type = #tpu.core_type<tc>, window_params = [{transform_indices = @transform_0, window_bounds = array<i64: 16, 32>}, {pipeline_mode = #tpu.pipeline_mode<synchronous>, transform_indices = @transform_1, window_bounds = array<i64: 1, 32>}, {pipeline_mode = #tpu.pipeline_mode<synchronous>, transform_indices = @transform_2, window_bounds = array<i64: 1, 32>}, {transform_indices = @transform_3, window_bounds = array<i64: 16, 32>}]} {
    %c0 = arith.constant 0 : index
    %c0_0 = arith.constant 0 : index
    %0 = vector.load %arg1[%c0, %c0_0] : memref<16x32xf32, #tpu.memory_space<vmem>>, vector<16x32xf32>
    %cst = arith.constant dense<0.000000e+00> : vector<16xf32>
    %1 = vector.multi_reduction <add>, %0, %cst [1] : vector<16x32xf32> to vector<16xf32>
    %2 = vector.shape_cast %1 : vector<16xf32> to vector<16x1xf32>
    %cst_1 = arith.constant 3.200000e+01 : f32
    %3 = vector.broadcast %cst_1 : f32 to vector<16x1xf32>
    %4 = arith.divf %2, %3 : vector<16x1xf32>
    %5 = vector.broadcast %4 : vector<16x1xf32> to vector<16x32xf32>
    %6 = arith.subf %0, %5 : vector<16x32xf32>
    %7 = vector.broadcast %4 : vector<16x1xf32> to vector<16x32xf32>
    %8 = arith.subf %0, %7 : vector<16x32xf32>
    %9 = arith.mulf %6, %8 : vector<16x32xf32>
    %cst_2 = arith.constant dense<0.000000e+00> : vector<16xf32>
    %10 = vector.multi_reduction <add>, %9, %cst_2 [1] : vector<16x32xf32> to vector<16xf32>
    %11 = vector.shape_cast %10 : vector<16xf32> to vector<16x1xf32>
    %cst_3 = arith.constant 3.200000e+01 : f32
    %12 = vector.broadcast %cst_3 : f32 to vector<16x1xf32>
    %13 = arith.divf %11, %12 : vector<16x1xf32>
    %14 = vector.broadcast %4 : vector<16x1xf32> to vector<16x32xf32>
    %15 = arith.subf %0, %14 : vector<16x32xf32>
    %cst_4 = arith.constant 9.99999996E-13 : f32
    %16 = vector.broadcast %cst_4 : f32 to vector<16x1xf32>
    %17 = arith.addf %13, %16 : vector<16x1xf32>
    %18 = math.rsqrt %17 : vector<16x1xf32>
    %19 = vector.broadcast %18 : vector<16x1xf32> to vector<16x32xf32>
    %20 = arith.mulf %15, %19 : vector<16x32xf32>
    %c0_5 = arith.constant 0 : index
    %c0_6 = arith.constant 0 : index
    %21 = vector.load %arg2[%c0_5, %c0_6] : memref<1x32xf32, #tpu.memory_space<vmem>>, vector<1x32xf32>
    %22 = vector.broadcast %21 : vector<1x32xf32> to vector<16x32xf32>
    %23 = arith.mulf %20, %22 : vector<16x32xf32>
    %c0_7 = arith.constant 0 : index
    %c0_8 = arith.constant 0 : index
    %24 = vector.load %arg3[%c0_7, %c0_8] : memref<1x32xf32, #tpu.memory_space<vmem>>, vector<1x32xf32>
    %25 = vector.broadcast %24 : vector<1x32xf32> to vector<16x32xf32>
    %26 = arith.addf %23, %25 : vector<16x32xf32>
    %27 = arith.truncf %26 : vector<16x32xf32> to vector<16x32xbf16>
    %c0_9 = arith.constant 0 : index
    %c0_10 = arith.constant 0 : index
    %28 = vector.load %arg4[%c0_9, %c0_10] : memref<16x32xbf16, #tpu.memory_space<vmem>>, vector<16x32xbf16>
    tpu.vector_store %arg4[%c0_9, %c0_10], %27 {strides = array<i32>} : memref<16x32xbf16, #tpu.memory_space<vmem>>, vector<16x32xbf16>,
    return
  }
  func.func @transform_0(%arg0: i32) -> (i32, i32) {
    %c0_i32 = arith.constant 0 : i32
    %c0_i32_0 = arith.constant 0 : i32
    return %arg0, %c0_i32 : i32, i32
  }
  func.func @transform_1(%arg0: i32) -> (i32, i32) {
    %c0_i32 = arith.constant 0 : i32
    %c0_i32_0 = arith.constant 0 : i32
    %c0_i32_1 = arith.constant 0 : i32
    return %c0_i32, %c0_i32_0 : i32, i32
  }
  func.func @transform_2(%arg0: i32) -> (i32, i32) {
    %c0_i32 = arith.constant 0 : i32
    %c0_i32_0 = arith.constant 0 : i32
    %c0_i32_1 = arith.constant 0 : i32
    return %c0_i32, %c0_i32_0 : i32, i32
  }
  func.func @transform_3(%arg0: i32) -> (i32, i32) {
    %c0_i32 = arith.constant 0 : i32
    %c0_i32_0 = arith.constant 0 : i32
    return %arg0, %c0_i32 : i32, i32
  }
}

</mosaic_0001>

<bundles_post_ra>
// kernel: tpu_custom_call.1
= control target key start
LH: loop header
LB: loop body
LE: loop exit
PB: predicated region body
PF: predicated region fallthrough
CT: control target
= control target key end

     0   :  { %8 = vsyncpa [#allocation3], 0  ;;  %s207_s0 = inlined_call_operand.hbm [shape: f32[16,32], index: 0, kind: input, shape index: {}]   ;;  %s208_s1 = inlined_call_operand.vmem [shape: f32[1,32], index: 1, kind: input, shape index: {}]   ;;  %s209_s2 = inlined_call_operand.vmem [shape: f32[1,32], index: 2, kind: input, shape index: {}]   ;;  %s210_s3 = inlined_call_operand.hbm [shape: bf16[16,32], index: 3, kind: output, shape index: {}]  }
   0x1   :  { %9 = vsyncpa [#allocation4], 0  ;;  %s165_s12 = smov [#allocation2]  }
   0x2   :  { %s15_s13 = sshll.u32 %s165_s12, 4  ;;  %s16_s13 = int_to_ptr.vmem [resolvable:$true] %s15_s13 }
   0x3   :  { %s129_s14 = scalar_lea.vmem %s16_s13, 256  ;;  %p134_p1 = scmp.lt.s32.totalorder %s16_s13, %s16_s13 }
   0x4   :  { %p130_p0 = scmp.ne.s32.totalorder %s16_s13, %s129_s14  ;;  %p135_p2 = scmp.lt.s32.totalorder %s129_s14, %s129_s14 }
   0x6   :  { %p136_p3 = por %p135_p2, %p134_p1 }
   0x8   :  { %p137_p4 = pnand %p136_p3, %p130_p0 }
   0xa   :  { %140 = shalt.err (!%p137_p4)
}
   0xb   :  { %s166_s15 = smov 128   ;;  %s167_s16 = smov 8  }
   0xc   :  { %21 = dma.hbm_to_vmem [thread:$0]  %s207_s0, 256, %s16_s13, [#allocation3], %s166_s15, %s166_s15, %s167_s16  }
   0xd   :  { %161 = dma.done.wait [#allocation3], 256  }
   0xe   :  { %162 = vsyncadd [#allocation3], 4294967040  ;;  %vm31_vm0 = vcmask 261120   ;;  %v29_v0 = vld [vmem:[#allocation2] sm:$0xff]  ;;  %v30_v1 = vld [vmem:[#allocation2 + $0x8] sm:$0xff]  ;;  %vm85_vm1 = vcmask 257024  }
   0xf   :  { %v32_v2 = vsel %vm31_vm0, %v29_v0, 0.0  ;;  %v35_v3 = vsel %vm31_vm0, %v30_v1, 0.0  ;;  %v105_v21 = vld [vmem:[%s208_s1] ss:$0 sm:$0xff]  ;;  %s168_s22 = smov [#allocation5]  }
  0x10   :  { %33 = vadd.xlane.f32.xlu0 %v32_v2  ;;  %v106_v23 = vld [vmem:[%s209_s2] ss:$0 sm:$0xff]  ;;  %s93_s23 = sshll.u32 %s168_s22, 4  ;;  %s94_s23 = int_to_ptr.vmem [resolvable:$true] %s93_s23 }
  0x11   :  { %s141_s1 = scalar_lea.vmem %s94_s23, 128  ;;  %p146_p6 = scmp.lt.s32.totalorder %s94_s23, %s94_s23 }
  0x12   :  { %p142_p5 = scmp.ne.s32.totalorder %s94_s23, %s141_s1  ;;  %p147_p7 = scmp.lt.s32.totalorder %s141_s1, %s141_s1 }
  0x14   :  { %36 = vadd.xlane.f32.xlu0 %v35_v3  ;;  %p148_p8 = por %p147_p7, %p146_p6 }
  0x16   :  { %p149_p9 = pnand %p148_p8, %p142_p5 }
  0x99   :  { %v34_v4 = vpop.xlane.xlu0 %33 }
  0x9a   :  { %v39_v5 = vmul.f32 0.03125, %v34_v4 }
  0x9c   :  { %v41_v6 = vsub.f32 %v29_v0, %v39_v5 }
  0x9d   :  { %v37_v7 = vpop.xlane.xlu0 %36 }
  0x9e   :  { %v40_v8 = vmul.f32 0.03125, %v37_v7  ;;  %v43_v9 = vmul.f32 %v41_v6, %v41_v6 }
  0xa0   :  { %v42_v10 = vsub.f32 %v30_v1, %v40_v8  ;;  %v45_v11 = vsel %vm31_vm0, %v43_v9, 0.0 }
  0xa1   :  { %46 = vadd.xlane.f32.xlu1 %v45_v11 }
  0xa2   :  { %v44_v12 = vmul.f32 %v42_v10, %v42_v10 }
  0xa4   :  { %v48_v13 = vsel %vm31_vm0, %v44_v12, 0.0 }
  0xa5   :  { %49 = vadd.xlane.f32.xlu1 %v48_v13 }
 0x12a   :  { %v47_v14 = vpop.xlane.xlu1 %46 }
 0x12b   :  { %v51_v15 = vmul.f32 0.03125, %v47_v14 }
 0x12d   :  { %v53_v16 = vadd.f32 1e-12, %v51_v15 }
 0x12e   :  { %v50_v17 = vpop.xlane.xlu1 %49 }
 0x12f   :  { %117 = vrsqrt.f32 %v53_v16  ;;  %v52_v18 = vmul.f32 0.03125, %v50_v17 }
 0x131   :  { %v54_v19 = vadd.f32 1e-12, %v52_v18 }
 0x133   :  { %119 = vrsqrt.f32 %v54_v19 }
 0x13c   :  { %v118_v20 = vpop.eup %117 }
 0x13d   :  { %v57_v22 = vmul.f32 %v118_v20, %v41_v6 }
 0x13f   :  { %v66_v24 = vmul.f32 %v105_v21, %v57_v22 }
 0x140   :  { %v120_v25 = vpop.eup %119 }
 0x141   :  { %v58_v26 = vmul.f32 %v120_v25, %v42_v10  ;;  %v75_v27 = vadd.f32 %v106_v23, %v66_v24 }
 0x143   :  { %v67_v28 = vmul.f32 %v105_v21, %v58_v26  ;;  %v109_v29 = vpack.c.bf16 %v75_v27, %v75_v27 }
 0x145   :  { %v76_v30 = vadd.f32 %v106_v23, %v67_v28  ;;  %86 = vst.msk [vmem:[#allocation5] sm:$0xf] %vm85_vm1, %v109_v29 }
 0x147   :  { %v110_v31 = vpack.c.bf16 %v76_v30, %v76_v30 }
 0x149   :  { %87 = vst.msk [vmem:[#allocation5 + $0x4] sm:$0xf] %vm85_vm1, %v110_v31 }
 0x14a   :  { %152 = shalt.err (!%p149_p9)
}
 0x14b   :  { %s169_s2 = smov 64   ;;  %s170_s24 = smov 4  }
 0x14c   :  { %99 = dma.vmem_to_hbm [thread:$0]  %s94_s23, 128, %s210_s3, [#allocation4], %s169_s2, %s169_s2, %s170_s24  }
 0x14d   :  { %163 = dma.done.wait [#allocation4], 128  }
 0x14e   :  { %164 = vsyncadd [#allocation4], 4294967168 }
 0x14f   :  { %103 = vsyncpa [#allocation3], 1 }
 0x150   :  { %104 = vsyncpa [#allocation4], 1 }

</bundles_post_ra>
